<compile_context>
chip_gen: v5e
topology: v5e:2x2
jax: 0.10.0
libtpu: 0.0.40
codegen_flags: <defaults>
</compile_context>

<pallas_src>
import math

import jax
import jax.numpy as jnp
from jax.experimental import pallas as pl
from jax.experimental.pallas import tpu as pltpu


def _round_up(n, m):
    return ((n + m - 1) // m) * m


def _pick_batch_tile(B, tb_max):
    """Pick (tb, Bp) so that x is (almost) never padded.

    - B <= tb_max: one full-batch tile (a full-dim block is always legal, no (8,.) constraint).
    - else: largest multiple-of-8 divisor of B that is <= tb_max (no padding).
    - last resort: pad B up to a multiple of tb_max.
    """
    if B <= tb_max:
        return B, B
    cand = (tb_max // 8) * 8
    while cand >= 8:
        if B % cand == 0:
            return cand, B
        cand -= 8
    tb = (tb_max // 8) * 8 or 8
    return tb, _round_up(B, tb)


def _linear_kernel(x_ref, wt_ref, b_ref, o_ref):
    # x_ref : (tb, K) f32|bf16   wt_ref : (K, tn) bf16   b_ref : (1, tn) f32   o_ref : (tb, tn)
    x_bf16 = x_ref[...].astype(jnp.bfloat16)  # no-op when x was pre-cast in the wrapper
    acc = jnp.dot(x_bf16, wt_ref[...], preferred_element_type=jnp.float32)  # bf16 MXU, f32 accum
    o_ref[...] = (acc + b_ref[...]).astype(o_ref.dtype)


def prepare_predictor_params(weight, bias, *, param_dtype=jnp.bfloat16):
    """One-time parameter prep (do this at init, not per forward call).

    weight : [num_classes, 2048]  (PyTorch nn.Linear layout)
    bias   : [num_classes]
    Returns (wt, b2): wt = [2048, Cp] in `param_dtype`, b2 = [1, Cp] f32,
    where Cp = num_classes rounded up to a multiple of 128 (lane-dense output tiles).
    """
    C, K = weight.shape
    Cp = _round_up(C, 128)
    wt = jnp.transpose(weight).astype(param_dtype)  # [K, C]
    b = bias.astype(jnp.float32)
    if Cp != C:
        wt = jnp.pad(wt, ((0, 0), (0, Cp - C)))
        b = jnp.pad(b, (0, Cp - C))
    return wt, b.reshape(1, Cp)


def predictor_forward(x, wt, b2, num_classes, *, tb=256, tn=1024):
    """y = x @ W.T + b using a Pallas TPU kernel.

    x   : [B, 2048] (f32 or bf16)
    wt  : [2048, Cp] bf16 (from prepare_predictor_params)
    b2  : [1, Cp] f32
    Returns [B, num_classes] in x's original dtype.
    """
    B, K = x.shape
    K2, Cp = wt.shape
    assert K == K2 and Cp % 128 == 0 and num_classes <= Cp
    out_dtype = x.dtype

    # ---- class tile: multiple of 128 that divides Cp, as large as allowed ----
    tn = min(tn, Cp)
    if Cp % tn != 0:
        tn = math.gcd(Cp, tn)  # gcd of two 128-multiples is a 128-multiple
    n_class_tiles = Cp // tn

    # ---- batch tile: avoid padding x whenever possible ----
    tb, Bp = _pick_batch_tile(B, tb)
    if Bp != B:
        x = jnp.pad(x, ((0, Bp - B), (0, 0)))  # rare fallback path only

    # ---- pre-cast x to bf16 only when it will be streamed from HBM more than once ----
    if n_class_tiles >= 2 and x.dtype != jnp.bfloat16:
        x = x.astype(jnp.bfloat16)

    grid = (n_class_tiles, Bp // tb)  # class tiles outermost -> weight DMA hoisted over batch
    # v7x: with >=2 class tiles, keep ONLY the class axis "parallel" so the two TensorCores
    # read disjoint weight columns; otherwise let the batch axis be the parallel one.
    dims = ("parallel", "arbitrary") if n_class_tiles >= 2 else ("arbitrary", "parallel")

    cost = pl.CostEstimate(
        flops=2 * Bp * K * Cp,
        transcendentals=0,
        bytes_accessed=(
            x.size * x.dtype.itemsize
            + wt.size * wt.dtype.itemsize
            + b2.size * b2.dtype.itemsize
            + Bp * Cp * jnp.dtype(out_dtype).itemsize
        ),
    )

    out = pl.pallas_call(
        _linear_kernel,
        out_shape=jax.ShapeDtypeStruct((Bp, Cp), out_dtype),
        grid_spec=pltpu.PrefetchScalarGridSpec(
            num_scalar_prefetch=0,
            grid=grid,
            in_specs=[
                pl.BlockSpec((tb, K), lambda j, i: (i, 0)),   # x tile (full K)
                pl.BlockSpec((K, tn), lambda j, i: (0, j)),   # W^T class tile (bf16)
                pl.BlockSpec((1, tn), lambda j, i: (0, j)),   # bias tile
            ],
            out_specs=pl.BlockSpec((tb, tn), lambda j, i: (i, j)),
        ),
        compiler_params=pltpu.CompilerParams(
            dimension_semantics=dims,
            vmem_limit_bytes=32 * 1024 * 1024,  # tiles above need ~14 MiB double-buffered
        ),
        cost_estimate=cost,
    )(x, wt, b2)

    # Slice is a no-op on the batch axis whenever padding was avoided (the common case).
    return out[:B, :num_classes]


if __name__ == "__main__":
    key = jax.random.PRNGKey(0)

    # --- Check 1: tiny batch, single class tile (full-batch tile, in-kernel cast path) ---
    B1, IN_FEATURES, NC1 = 4, 2048, 10
    k1, k2, k3, k4, k5, k6 = jax.random.split(key, 6)
    x1 = jax.random.normal(k1, (B1, IN_FEATURES), dtype=jnp.float32)
    w1 = jax.random.normal(k2, (NC1, IN_FEATURES), dtype=jnp.float32) * 0.02
    bias1 = jax.random.normal(k3, (NC1,), dtype=jnp.float32) * 0.02
    wt1, b1_2d = prepare_predictor_params(w1, bias1)       # one-time prep, not per call
    y1 = jax.block_until_ready(predictor_forward(x1, wt1, b1_2d, NC1))
    y1_ref = x1 @ w1.T + bias1
    assert y1.shape == (B1, NC1)
    assert jnp.allclose(y1, y1_ref, atol=5e-2, rtol=5e-2), "mismatch vs reference (check 1)"

    # --- Check 2: multi class-tile + multi batch-tile path (pre-cast x, class-parallel dims) ---
    B2, NC2 = 48, 300
    x2 = jax.random.normal(k4, (B2, IN_FEATURES), dtype=jnp.float32)
    w2 = jax.random.normal(k5, (NC2, IN_FEATURES), dtype=jnp.float32) * 0.02
    bias2 = jax.random.normal(k6, (NC2,), dtype=jnp.float32) * 0.02
    wt2, b2_2d = prepare_predictor_params(w2, bias2)
    y2 = jax.block_until_ready(predictor_forward(x2, wt2, b2_2d, NC2, tb=16, tn=128))
    y2_ref = x2 @ w2.T + bias2
    assert y2.shape == (B2, NC2)
    assert jnp.allclose(y2, y2_ref, atol=5e-2, rtol=5e-2), "mismatch vs reference (check 2)"

    print("KERNEL_OK")
</pallas_src>

<mosaic_0001>
module attributes {stable_mosaic.version = 11 : i64} {
  func.func @_linear_kernel(%arg0: i32, %arg1: i32, %arg2: memref<4x2048xf32, #tpu.memory_space<vmem>>, %arg3: memref<2048x128xbf16, #tpu.memory_space<vmem>>, %arg4: memref<1x128xf32, #tpu.memory_space<vmem>>, %arg5: memref<4x128xf32, #tpu.memory_space<vmem>>) attributes {dimension_semantics = [#tpu.dimension_semantics<arbitrary>, #tpu.dimension_semantics<parallel>], iteration_bounds = array<i64: 1, 1>, scalar_prefetch = 0 : i64, scratch_operands = 0 : i64, tpu.core_type = #tpu.core_type<tc>, window_params = [{transform_indices = @transform_0, window_bounds = array<i64: 4, 2048>}, {transform_indices = @transform_1, window_bounds = array<i64: 2048, 128>}, {transform_indices = @transform_2, window_bounds = array<i64: 1, 128>}, {transform_indices = @transform_3, window_bounds = array<i64: 4, 128>}]} {
    %c0 = arith.constant 0 : index
    %c0_0 = arith.constant 0 : index
    %0 = vector.load %arg2[%c0, %c0_0] : memref<4x2048xf32, #tpu.memory_space<vmem>>, vector<4x2048xf32>
    %1 = arith.truncf %0 : vector<4x2048xf32> to vector<4x2048xbf16>
    %c0_1 = arith.constant 0 : index
    %c0_2 = arith.constant 0 : index
    %2 = vector.load %arg3[%c0_1, %c0_2] : memref<2048x128xbf16, #tpu.memory_space<vmem>>, vector<2048x128xbf16>
    %cst = arith.constant dense<0.000000e+00> : vector<4x128xf32>
    %3 = tpu.matmul %1, %2, %cst {dimension_numbers = #tpu.dot_dimension_numbers<[1], [0], [0], [1], [0, 0, 1, 1], [], []>} : vector<4x2048xbf16>, vector<2048x128xbf16>, vector<4x128xf32> -> vector<4x128xf32>
    %c0_3 = arith.constant 0 : index
    %c0_4 = arith.constant 0 : index
    %4 = vector.load %arg4[%c0_3, %c0_4] : memref<1x128xf32, #tpu.memory_space<vmem>>, vector<1x128xf32>
    %5 = vector.broadcast %4 : vector<1x128xf32> to vector<4x128xf32>
    %6 = arith.addf %3, %5 : vector<4x128xf32>
    %c0_5 = arith.constant 0 : index
    %c0_6 = arith.constant 0 : index
    %7 = vector.load %arg5[%c0_5, %c0_6] : memref<4x128xf32, #tpu.memory_space<vmem>>, vector<4x128xf32>
    tpu.vector_store %arg5[%c0_5, %c0_6], %6 {strides = array<i32>} : memref<4x128xf32, #tpu.memory_space<vmem>>, vector<4x128xf32>,
    return
  }
  func.func @transform_0(%arg0: i32, %arg1: i32) -> (i32, i32) {
    %c0_i32 = arith.constant 0 : i32
    %c0_i32_0 = arith.constant 0 : i32
    return %arg1, %c0_i32 : i32, i32
  }
  func.func @transform_1(%arg0: i32, %arg1: i32) -> (i32, i32) {
    %c0_i32 = arith.constant 0 : i32
    %c0_i32_0 = arith.constant 0 : i32
    return %c0_i32, %arg0 : i32, i32
  }
  func.func @transform_2(%arg0: i32, %arg1: i32) -> (i32, i32) {
    %c0_i32 = arith.constant 0 : i32
    %c0_i32_0 = arith.constant 0 : i32
    return %c0_i32, %arg0 : i32, i32
  }
  func.func @transform_3(%arg0: i32, %arg1: i32) -> (i32, i32) {
    %c0_i32 = arith.constant 0 : i32
    return %arg1, %arg0 : i32, i32
  }
}

</mosaic_0001>

<bundles_post_ra>
// kernel: tpu_custom_call.1
= control target key start
LH: loop header
LB: loop body
LE: loop exit
PB: predicated region body
PF: predicated region fallthrough
CT: control target
= control target key end

     0   :  { %8 = vsyncpa [#allocation3], 0  ;;  %s2144_s0 = inlined_call_operand.hbm [shape: f32[4,2048], index: 0, kind: input, shape index: {}]   ;;  %s2145_s1 = inlined_call_operand.hbm [shape: bf16[2048,128], index: 1, kind: input, shape index: {}]   ;;  %s2146_s2 = inlined_call_operand.vmem [shape: f32[1,128], index: 2, kind: input, shape index: {}]   ;;  %s2147_s3 = inlined_call_operand.hbm [shape: f32[4,128], index: 3, kind: output, shape index: {}]  }
   0x1   :  { %9 = vsyncpa [#allocation6], 0 }
   0x2   :  { %10 = vsyncpa [#allocation4], 0  ;;  %s16_s14 = sshll.u32 %s2144_s0, 4  ;;  %s2099_s15 = smov [#allocation2]   ;;  %s17_s14 = int_to_ptr.hbm [resolvable:$true] %s16_s14 }
   0x3   :  { %s18_s16 = sshll.u32 %s2099_s15, 4  ;;  %s26_s19 = sshll.u32 %s2145_s1, 4  ;;  %s19_s16 = int_to_ptr.vmem [resolvable:$true] %s18_s16  ;;  %s27_s19 = int_to_ptr.hbm [resolvable:$true] %s26_s19 }
   0x4   :  { %21 = dma.hbm_to_vmem [thread:$0]  %s17_s14, 1024, %s19_s16, [#allocation3]  }
   0x5   :  { %s2100_s20 = smov [#allocation5]   ;;  %s2101_s22 = smov 64  }
   0x6   :  { %s28_s21 = sshll.u32 %s2100_s20, 4  ;;  %s2102_s23 = smov 4   ;;  %s29_s21 = int_to_ptr.vmem [resolvable:$true] %s28_s21 }
   0x7   :  { %34 = dma.hbm_to_vmem [thread:$0]  %s27_s19, 16384, %s29_s21, [#allocation6], %s2101_s22, %s2101_s22, %s2102_s23  }
   0x8   :  { %2093 = dma.done.wait [#allocation3], 1024  }
   0x9   :  { %2094 = vsyncadd [#allocation3], 4294966272 }
   0xa   :  { %2095 = dma.done.wait [#allocation6], 16384  }
   0xb   :  { %2096 = vsyncadd [#allocation6], 4294950912  ;;  %v1894_v0 = vld [vmem:[#allocation5 + $0x38] sm:$0xff]  ;;  %v1893_v4 = vld [vmem:[#allocation5 + $0x30] sm:$0xff]  ;;  %s1364_s27 = sshll.u32 %s2147_s3, 4  ;;  %s1365_s27 = int_to_ptr.hbm [resolvable:$true] %s1364_s27 }
   0xc   :  { %v1902_v1 = vld [vmem:[#allocation5 + $0x78] sm:$0xff]  ;;  %1148 = vmatpush.bf16.msra.mxu0 %v1894_v0  ;;  %v1901_v5 = vld [vmem:[#allocation5 + $0x70] sm:$0xff]  ;;  %v1892_v8 = vld [vmem:[#allocation5 + $0x28] sm:$0xff] }
   0xd   :  { %v1910_v2 = vld [vmem:[#allocation5 + $0xb8] sm:$0xff]  ;;  %1161 = vmatpush.bf16.msra.mxu1 %v1902_v1  ;;  %v1909_v6 = vld [vmem:[#allocation5 + $0xb0] sm:$0xff]  ;;  %v1900_v9 = vld [vmem:[#allocation5 + $0x68] sm:$0xff] }
   0xe   :  { %v1918_v3 = vld [vmem:[#allocation5 + $0xf8] sm:$0xff]  ;;  %1174 = vmatpush.bf16.msra.mxu2 %v1910_v2  ;;  %v1917_v7 = vld [vmem:[#allocation5 + $0xf0] sm:$0xff]  ;;  %v1908_v10 = vld [vmem:[#allocation5 + $0xa8] sm:$0xff] }
   0xf   :  { %1187 = vmatpush.bf16.msra.mxu3 %v1918_v3  ;;  %v1916_v11 = vld [vmem:[#allocation5 + $0xe8] sm:$0xff]  ;;  %v1891_v12 = vld [vmem:[#allocation5 + $0x20] sm:$0xff]  ;;  %v1890_v16 = vld [vmem:[#allocation5 + $0x18] sm:$0xff] }
  0x10   :  { %1149 = vmatpush.bf16.msra.mxu0 %v1893_v4  ;;  %v1899_v13 = vld [vmem:[#allocation5 + $0x60] sm:$0xff]  ;;  %v1898_v17 = vld [vmem:[#allocation5 + $0x58] sm:$0xff]  ;;  %v1889_v20 = vld [vmem:[#allocation5 + $0x10] sm:$0xff] }
  0x11   :  { %1162 = vmatpush.bf16.msra.mxu1 %v1901_v5  ;;  %v1907_v14 = vld [vmem:[#allocation5 + $0xa0] sm:$0xff]  ;;  %v1906_v18 = vld [vmem:[#allocation5 + $0x98] sm:$0xff]  ;;  %v46_v21 = vld [vmem:[#allocation2 + $0x8] sm:$0xff] }
  0x12   :  { %1175 = vmatpush.bf16.msra.mxu2 %v1909_v6  ;;  %v1915_v15 = vld [vmem:[#allocation5 + $0xe0] sm:$0xff]  ;;  %v1914_v19 = vld [vmem:[#allocation5 + $0xd8] sm:$0xff]  ;;  %v1897_v22 = vld [vmem:[#allocation5 + $0x50] sm:$0xff]  ;;  %63 = vst [vmem:[#allocation1 + $0x10] ss:$2 sm:$0xff] %v46_v21 }
  0x13   :  { %1188 = vmatpush.bf16.msra.mxu3 %v1917_v7  ;;  %v45_v23 = vld [vmem:[#allocation2] sm:$0xff]  ;;  %v1905_v24 = vld [vmem:[#allocation5 + $0x90] sm:$0xff]  ;;  %v1888_v26 = vld [vmem:[#allocation5 + $0x8] sm:$0xff] }
  0x14   :  { %1150 = vmatpush.bf16.msra.mxu0 %v1892_v8  ;;  %v1913_v25 = vld [vmem:[#allocation5 + $0xd0] sm:$0xff]  ;;  %61 = vst [vmem:[#allocation1] ss:$2 sm:$0xff] %v45_v23  ;;  %v1896_v27 = vld [vmem:[#allocation5 + $0x48] sm:$0xff]  ;;  %v1887_v31 = vld [vmem:[#allocation5] sm:$0xff] }
  0x15   :  { %1163 = vmatpush.bf16.msra.mxu1 %v1900_v9  ;;  %v1904_v28 = vld [vmem:[#allocation5 + $0x88] sm:$0xff]  ;;  %v49_v32 = vld [vmem:[#allocation2 + $0x20] sm:$0xff]  ;;  %v1926_v40 = vld [vmem:[#allocation5 + $0x138] sm:$0xff] }
  0x16   :  { %1176 = vmatpush.bf16.msra.mxu2 %v1908_v10  ;;  %v1912_v29 = vld [vmem:[#allocation5 + $0xc8] sm:$0xff]  ;;  %v1895_v35 = vld [vmem:[#allocation5 + $0x40] sm:$0xff]  ;;  %v1934_v41 = vld [vmem:[#allocation5 + $0x178] sm:$0xff] }
  0x17   :  { %1189 = vmatpush.bf16.msra.mxu3 %v1916_v11  ;;  %v50_v30 = vld [vmem:[#allocation2 + $0x28] sm:$0xff]  ;;  %v1903_v36 = vld [vmem:[#allocation5 + $0x80] sm:$0xff]  ;;  %v1942_v42 = vld [vmem:[#allocation5 + $0x1b8] sm:$0xff] }
  0x18   :  { %1151 = vmatpush.bf16.msra.mxu0 %v1891_v12  ;;  %v1911_v37 = vld [vmem:[#allocation5 + $0xc0] sm:$0xff]  ;;  %v1950_v43 = vld [vmem:[#allocation5 + $0x1f8] sm:$0xff]  ;;  %v47_v47 = vld [vmem:[#allocation2 + $0x10] sm:$0xff] }
  0x19   :  { %1164 = vmatpush.bf16.msra.mxu1 %v1899_v13  ;;  %v70_v33 = vld.sshfl [vmem:[#allocation1 + $0x10] sm:$0xff pattern:$0x75316420]  ;;  %v71_v34 = vld.sshfl [vmem:[#allocation1 + $0x18] sm:$0xff pattern:$0x75316420] }
  0x1a   :  { %1177 = vmatpush.bf16.msra.mxu2 %v1907_v14  ;;  %77 = vst [vmem:[#allocation1 + $0x10] ss:$2 sm:$0xff] %v50_v30  ;;  %v48_v44 = vld [vmem:[#allocation2 + $0x18] sm:$0xff]  ;;  %v106_v45 = vpack.c.bf16 %v70_v33, %v70_v33  ;;  %v107_v48 = vpack.c.bf16 %v71_v34, %v71_v34  ;;  %v1925_v50 = vld [vmem:[#allocation5 + $0x130] sm:$0xff]  ;;  %v1924_v54 = vld [vmem:[#allocation5 + $0x128] sm:$0xff] }
  0x1b   :  { %1190 = vmatpush.bf16.msra.mxu3 %v1915_v15  ;;  %v68_v38 = vld.sshfl [vmem:[#allocation1] sm:$0xff pattern:$0x75316420]  ;;  %v69_v39 = vld.sshfl [vmem:[#allocation1 + $0x8] sm:$0xff pattern:$0x75316420] }
  0x1c   :  { %1152 = vmatpush.bf16.msra.mxu0 %v1890_v16  ;;  %76 = vst [vmem:[#allocation1] ss:$2 sm:$0xff] %v49_v32  ;;  %v104_v46 = vpack.c.bf16 %v68_v38, %v68_v38  ;;  %v105_v49 = vpack.c.bf16 %v69_v39, %v69_v39  ;;  %v1933_v51 = vld [vmem:[#allocation5 + $0x170] sm:$0xff]  ;;  %v52_v55 = vld [vmem:[#allocation2 + $0x38] sm:$0xff]  ;;  %v1932_v56 = vld [vmem:[#allocation5 + $0x168] sm:$0xff] }
  0x1d   :  { %1165 = vmatpush.bf16.msra.mxu1 %v1898_v17  ;;  %67 = vst [vmem:[#allocation1 + $0x30] ss:$2 sm:$0xff] %v48_v44  ;;  %v1941_v52 = vld [vmem:[#allocation5 + $0x1b0] sm:$0xff]  ;;  %v1940_v57 = vld [vmem:[#allocation5 + $0x1a8] sm:$0xff]  ;;  %v1923_v61 = vld [vmem:[#allocation5 + $0x120] sm:$0xff] }
  0x1e   :  { %1178 = vmatpush.bf16.msra.mxu2 %v1906_v18  ;;  %65 = vst [vmem:[#allocation1 + $0x20] ss:$2 sm:$0xff] %v47_v47  ;;  %v1949_v53 = vld [vmem:[#allocation5 + $0x1f0] sm:$0xff]  ;;  %v1948_v58 = vld [vmem:[#allocation5 + $0x1e8] sm:$0xff]  ;;  %v1931_v62 = vld [vmem:[#allocation5 + $0x160] sm:$0xff] }
  0x1f   :  { %1191 = vmatpush.bf16.msra.mxu3 %v1914_v19  ;;  %v51_v63 = vld [vmem:[#allocation2 + $0x30] sm:$0xff]  ;;  %v1939_v2 = vld [vmem:[#allocation5 + $0x1a0] sm:$0xff]  ;;  %v1922_v4 = vld [vmem:[#allocation5 + $0x118] sm:$0xff] }
  0x20   :  { %1153 = vmatpush.bf16.msra.mxu0 %v1889_v20  ;;  %v1947_v3 = vld [vmem:[#allocation5 + $0x1e0] sm:$0xff]  ;;  %v1930_v5 = vld [vmem:[#allocation5 + $0x158] sm:$0xff]  ;;  %v1921_v8 = vld [vmem:[#allocation5 + $0x110] sm:$0xff] }
  0x21   :  { %1166 = vmatpush.bf16.msra.mxu1 %v1897_v22  ;;  %v1938_v6 = vld [vmem:[#allocation5 + $0x198] sm:$0xff]  ;;  %v1929_v9 = vld [vmem:[#allocation5 + $0x150] sm:$0xff]  ;;  %v1920_v12 = vld [vmem:[#allocation5 + $0x108] sm:$0xff] }
  0x22   :  { %1179 = vmatpush.bf16.msra.mxu2 %v1905_v24  ;;  %v1946_v7 = vld [vmem:[#allocation5 + $0x1d8] sm:$0xff]  ;;  %v1937_v10 = vld [vmem:[#allocation5 + $0x190] sm:$0xff]  ;;  %v1928_v13 = vld [vmem:[#allocation5 + $0x148] sm:$0xff] }
  0x23   :  { %1192 = vmatpush.bf16.msra.mxu3 %v1913_v25  ;;  %v1945_v11 = vld [vmem:[#allocation5 + $0x1d0] sm:$0xff]  ;;  %v1936_v14 = vld [vmem:[#allocation5 + $0x188] sm:$0xff]  ;;  %v1919_v16 = vld [vmem:[#allocation5 + $0x100] sm:$0xff] }
  0x24   :  { %1154 = vmatpush.bf16.msra.mxu0 %v1888_v26  ;;  %v2130_v59 = vld.sshfl [vmem:[#allocation1 + $0x30] sm:$0xff pattern:$0x75316420]  ;;  %v2132_v60 = vld.sshfl [vmem:[#allocation1 + $0x38] sm:$0xff pattern:$0x75316420] }
  0x25   :  { %1167 = vmatpush.bf16.msra.mxu1 %v1896_v27  ;;  %79 = vst [vmem:[#allocation1 + $0x30] ss:$2 sm:$0xff] %v52_v55  ;;  %v72_v0 = vld.sshfl [vmem:[#allocation1 + $0x20] sm:$0xff pattern:$0x75316420]  ;;  %v1944_v15 = vld [vmem:[#allocation5 + $0x1c8] sm:$0xff]  ;;  %v110_v24 = vpack.c.bf16 %v2130_v59, %v2130_v59  ;;  %v111_v26 = vpack.c.bf16 %v2132_v60, %v2132_v60 }
  0x26   :  { %1180 = vmatpush.bf16.msra.mxu2 %v1904_v28  ;;  %v73_v1 = vld.sshfl [vmem:[#allocation1 + $0x28] sm:$0xff pattern:$0x75316420]  ;;  %v1958_v20 = vld [vmem:[#allocation5 + $0x238] sm:$0xff]  ;;  %v108_v25 = vpack.c.bf16 %v72_v0, %v72_v0  ;;  %v1957_v28 = vld [vmem:[#allocation5 + $0x230] sm:$0xff] }
  0x27   :  { %1193 = vmatpush.bf16.msra.mxu3 %v1912_v29  ;;  %78 = vst [vmem:[#allocation1 + $0x20] ss:$2 sm:$0xff] %v51_v63  ;;  %v1927_v17 = vld [vmem:[#allocation5 + $0x140] sm:$0xff]  ;;  %v1966_v21 = vld [vmem:[#allocation5 + $0x278] sm:$0xff]  ;;  %v109_v27 = vpack.c.bf16 %v73_v1, %v73_v1  ;;  %v1965_v29 = vld [vmem:[#allocation5 + $0x270] sm:$0xff] }
  0x28   :  { %1155 = vmatpush.bf16.msra.mxu0 %v1887_v31  ;;  %v1935_v18 = vld [vmem:[#allocation5 + $0x180] sm:$0xff]  ;;  %v1974_v22 = vld [vmem:[#allocation5 + $0x2b8] sm:$0xff]  ;;  %v1973_v30 = vld [vmem:[#allocation5 + $0x2b0] sm:$0xff] }
  0x29   :  { %1168 = vmatpush.bf16.msra.mxu1 %v1895_v35  ;;  %v1943_v19 = vld [vmem:[#allocation5 + $0x1c0] sm:$0xff]  ;;  %v1982_v23 = vld [vmem:[#allocation5 + $0x2f8] sm:$0xff]  ;;  %v1981_v31 = vld [vmem:[#allocation5 + $0x2f0] sm:$0xff] }
  0x2a   :  { %1181 = vmatpush.bf16.msra.mxu2 %v1903_v36  ;;  %v1956_v32 = vld [vmem:[#allocation5 + $0x228] sm:$0xff]  ;;  %v1955_v36 = vld [vmem:[#allocation5 + $0x220] sm:$0xff]  ;;  %v1953_v44 = vld [vmem:[#allocation5 + $0x210] sm:$0xff] }
  0x2b   :  { %1194 = vmatpush.bf16.msra.mxu3 %v1911_v37  ;;  %1156 = vmatmul.bf16.vlgmr.msra.gmra.mxu0 %v104_v46  ;;  %v1964_v33 = vld [vmem:[#allocation5 + $0x268] sm:$0xff]  ;;  %v1963_v37 = vld [vmem:[#allocation5 + $0x260] sm:$0xff]  ;;  %v1969_v46 = vld [vmem:[#allocation5 + $0x290] sm:$0xff] }
  0x2c   :  { %1200 = vmatpush.bf16.msrb.mxu0 %v1926_v40  ;;  %1169 = vmatmul.bf16.vlgmr.msra.gmra.mxu1 %v105_v49  ;;  %v1972_v34 = vld [vmem:[#allocation5 + $0x2a8] sm:$0xff]  ;;  %v1971_v38 = vld [vmem:[#allocation5 + $0x2a0] sm:$0xff]  ;;  %v1954_v40 = vld [vmem:[#allocation5 + $0x218] sm:$0xff] }
  0x2d   :  { %1213 = vmatpush.bf16.msrb.mxu1 %v1934_v41  ;;  %1182 = vmatmul.bf16.vlgmr.msra.gmra.mxu2 %v106_v45  ;;  %v1980_v35 = vld [vmem:[#allocation5 + $0x2e8] sm:$0xff]  ;;  %v1979_v39 = vld [vmem:[#allocation5 + $0x2e0] sm:$0xff]  ;;  %v1962_v41 = vld [vmem:[#allocation5 + $0x258] sm:$0xff] }
  0x2e   :  { %1226 = vmatpush.bf16.msrb.mxu2 %v1942_v42  ;;  %1195 = vmatmul.bf16.vlgmr.msra.gmra.mxu3 %v107_v48  ;;  %v1970_v42 = vld [vmem:[#allocation5 + $0x298] sm:$0xff]  ;;  %v1961_v45 = vld [vmem:[#allocation5 + $0x250] sm:$0xff]  ;;  %v1952_v48 = vld [vmem:[#allocation5 + $0x208] sm:$0xff] }
  0x2f   :  { %1239 = vmatpush.bf16.msrb.mxu3 %v1950_v43  ;;  %v1978_v43 = vld [vmem:[#allocation5 + $0x2d8] sm:$0xff]  ;;  %v1977_v47 = vld [vmem:[#allocation5 + $0x2d0] sm:$0xff]  ;;  %v1960_v49 = vld [vmem:[#allocation5 + $0x248] sm:$0xff] }
  0x30   :  { %1201 = vmatpush.bf16.msrb.mxu0 %v1925_v50  ;;  %v1968_v50 = vld [vmem:[#allocation5 + $0x288] sm:$0xff]  ;;  %v1975_v55 = vld [vmem:[#allocation5 + $0x2c0] sm:$0xff]  ;;  %v2014_v63 = vld [vmem:[#allocation5 + $0x3f8] sm:$0xff] }
  0x31   :  { %1214 = vmatpush.bf16.msrb.mxu1 %v1933_v51  ;;  %v1976_v51 = vld [vmem:[#allocation5 + $0x2c8] sm:$0xff]  ;;  %v81_v60 = vld.sshfl [vmem:[#allocation1 + $0x8] sm:$0xff pattern:$0x75316420] }
  0x32   :  { %1227 = vmatpush.bf16.msrb.mxu2 %v1941_v52  ;;  %v1951_v52 = vld [vmem:[#allocation5 + $0x200] sm:$0xff]  ;;  %v82_v59 = vld.sshfl [vmem:[#allocation1 + $0x10] sm:$0xff pattern:$0x75316420] }
  0x33   :  { %1240 = vmatpush.bf16.msrb.mxu3 %v1949_v53  ;;  %v1959_v53 = vld [vmem:[#allocation5 + $0x240] sm:$0xff]  ;;  %v114_v1 = vpack.c.bf16 %v82_v59, %v82_v59 }
  0x34   :  { %1202 = vmatpush.bf16.msrb.mxu0 %v1924_v54  ;;  %v1967_v54 = vld [vmem:[#allocation5 + $0x280] sm:$0xff] }
  0x35   :  { %1215 = vmatpush.bf16.msrb.mxu1 %v1932_v56  ;;  %v1990_v56 = vld [vmem:[#allocation5 + $0x338] sm:$0xff] }
  0x36   :  { %1228 = vmatpush.bf16.msrb.mxu2 %v1940_v57  ;;  %v1998_v57 = vld [vmem:[#allocation5 + $0x378] sm:$0xff] }
  0x37   :  { %1241 = vmatpush.bf16.msrb.mxu3 %v1948_v58  ;;  %v80_v58 = vld.sshfl [vmem:[#allocation1] sm:$0xff pattern:$0x75316420] }
  0x38   :  { %1203 = vmatpush.bf16.msrb.mxu0 %v1923_v61  ;;  %v83_v61 = vld.sshfl [vmem:[#allocation1 + $0x18] sm:$0xff pattern:$0x75316420]  ;;  %v112_v0 = vpack.c.bf16 %v80_v58, %v80_v58 }
  0x39   :  { %1216 = vmatpush.bf16.msrb.mxu1 %v1931_v62  ;;  %v2006_v62 = vld [vmem:[#allocation5 + $0x3b8] sm:$0xff] }
  0x3a   :  { %1229 = vmatpush.bf16.msrb.mxu2 %v1939_v2  ;;  %v113_v2 = vpack.c.bf16 %v81_v60, %v81_v60 }
  0x3b   :  { %1242 = vmatpush.bf16.msrb.mxu3 %v1947_v3  ;;  %v115_v3 = vpack.c.bf16 %v83_v61, %v83_v61 }
  0x3c   :  { %1204 = vmatpush.bf16.msrb.mxu0 %v1922_v4  ;;  %v1989_v4 = vld [vmem:[#allocation5 + $0x330] sm:$0xff] }
  0x3d   :  { %1217 = vmatpush.bf16.msrb.mxu1 %v1930_v5  ;;  %v1997_v5 = vld [vmem:[#allocation5 + $0x370] sm:$0xff] }
  0x3e   :  { %1230 = vmatpush.bf16.msrb.mxu2 %v1938_v6  ;;  %v2005_v6 = vld [vmem:[#allocation5 + $0x3b0] sm:$0xff] }
  0x3f   :  { %1243 = vmatpush.bf16.msrb.mxu3 %v1946_v7  ;;  %v2013_v7 = vld [vmem:[#allocation5 + $0x3f0] sm:$0xff] }
  0x40   :  { %1205 = vmatpush.bf16.msrb.mxu0 %v1921_v8  ;;  %v1988_v8 = vld [vmem:[#allocation5 + $0x328] sm:$0xff] }
  0x41   :  { %1218 = vmatpush.bf16.msrb.mxu1 %v1929_v9  ;;  %v1996_v9 = vld [vmem:[#allocation5 + $0x368] sm:$0xff] }
  0x42   :  { %1231 = vmatpush.bf16.msrb.mxu2 %v1937_v10  ;;  %v2004_v10 = vld [vmem:[#allocation5 + $0x3a8] sm:$0xff] }
  0x43   :  { %1244 = vmatpush.bf16.msrb.mxu3 %v1945_v11  ;;  %v2012_v11 = vld [vmem:[#allocation5 + $0x3e8] sm:$0xff] }
  0x44   :  { %1206 = vmatpush.bf16.msrb.mxu0 %v1920_v12  ;;  %v1987_v12 = vld [vmem:[#allocation5 + $0x320] sm:$0xff] }
  0x45   :  { %1219 = vmatpush.bf16.msrb.mxu1 %v1928_v13  ;;  %v1995_v13 = vld [vmem:[#allocation5 + $0x360] sm:$0xff] }
  0x46   :  { %1232 = vmatpush.bf16.msrb.mxu2 %v1936_v14  ;;  %v2003_v14 = vld [vmem:[#allocation5 + $0x3a0] sm:$0xff] }
  0x47   :  { %1245 = vmatpush.bf16.msrb.mxu3 %v1944_v15  ;;  %v2011_v15 = vld [vmem:[#allocation5 + $0x3e0] sm:$0xff] }
  0x48   :  { %1207 = vmatpush.bf16.msrb.mxu0 %v1919_v16  ;;  %v1986_v16 = vld [vmem:[#allocation5 + $0x318] sm:$0xff] }
  0x49   :  { %1220 = vmatpush.bf16.msrb.mxu1 %v1927_v17  ;;  %v1994_v17 = vld [vmem:[#allocation5 + $0x358] sm:$0xff] }
  0x4a   :  { %1233 = vmatpush.bf16.msrb.mxu2 %v1935_v18  ;;  %v2002_v18 = vld [vmem:[#allocation5 + $0x398] sm:$0xff] }
  0x4b   :  { %1246 = vmatpush.bf16.msrb.mxu3 %v1943_v19  ;;  %1208 = vmatmul.bf16.vlgmr.msrb.gmra.mxu0 %v108_v25  ;;  %v2010_v19 = vld [vmem:[#allocation5 + $0x3d8] sm:$0xff]  ;;  %v1992_v25 = vld [vmem:[#allocation5 + $0x348] sm:$0xff] }
  0x4c   :  { %1252 = vmatpush.bf16.msra.mxu0 %v1958_v20  ;;  %1221 = vmatmul.bf16.vlgmr.msrb.gmra.mxu1 %v109_v27  ;;  %v1985_v20 = vld [vmem:[#allocation5 + $0x310] sm:$0xff]  ;;  %v2008_v27 = vld [vmem:[#allocation5 + $0x3c8] sm:$0xff] }
  0x4d   :  { %1265 = vmatpush.bf16.msra.mxu1 %v1966_v21  ;;  %1234 = vmatmul.bf16.vlgmr.msrb.gmra.mxu2 %v110_v24  ;;  %v1993_v21 = vld [vmem:[#allocation5 + $0x350] sm:$0xff]  ;;  %v1984_v24 = vld [vmem:[#allocation5 + $0x308] sm:$0xff] }
  0x4e   :  { %1278 = vmatpush.bf16.msra.mxu2 %v1974_v22  ;;  %1247 = vmatmul.bf16.vlgmr.msrb.gmra.mxu3 %v111_v26  ;;  %v2001_v22 = vld [vmem:[#allocation5 + $0x390] sm:$0xff]  ;;  %v2000_v26 = vld [vmem:[#allocation5 + $0x388] sm:$0xff] }
  0x4f   :  { %1291 = vmatpush.bf16.msra.mxu3 %v1982_v23  ;;  %v2009_v23 = vld [vmem:[#allocation5 + $0x3d0] sm:$0xff] }
  0x50   :  { %1253 = vmatpush.bf16.msra.mxu0 %v1957_v28  ;;  %v1983_v28 = vld [vmem:[#allocation5 + $0x300] sm:$0xff] }
  0x51   :  { %1266 = vmatpush.bf16.msra.mxu1 %v1965_v29  ;;  %v1991_v29 = vld [vmem:[#allocation5 + $0x340] sm:$0xff] }
  0x52   :  { %1279 = vmatpush.bf16.msra.mxu2 %v1973_v30  ;;  %v1999_v30 = vld [vmem:[#allocation5 + $0x380] sm:$0xff] }
  0x53   :  { %1292 = vmatpush.bf16.msra.mxu3 %v1981_v31  ;;  %v2007_v31 = vld [vmem:[#allocation5 + $0x3c0] sm:$0xff] }
  0x54   :  { %1254 = vmatpush.bf16.msra.mxu0 %v1956_v32  ;;  %v84_v32 = vld.sshfl [vmem:[#allocation1 + $0x20] sm:$0xff pattern:$0x75316420] }
  0x55   :  { %1267 = vmatpush.bf16.msra.mxu1 %v1964_v33  ;;  %v85_v33 = vld.sshfl [vmem:[#allocation1 + $0x28] sm:$0xff pattern:$0x75316420] }
  0x56   :  { %1280 = vmatpush.bf16.msra.mxu2 %v1972_v34  ;;  %v86_v34 = vld.sshfl [vmem:[#allocation1 + $0x30] sm:$0xff pattern:$0x75316420] }
  0x57   :  { %1293 = vmatpush.bf16.msra.mxu3 %v1980_v35  ;;  %v87_v35 = vld.sshfl [vmem:[#allocation1 + $0x38] sm:$0xff pattern:$0x75316420] }
  0x58   :  { %1255 = vmatpush.bf16.msra.mxu0 %v1955_v36  ;;  %v116_v36 = vpack.c.bf16 %v84_v32, %v84_v32 }
  0x59   :  { %1268 = vmatpush.bf16.msra.mxu1 %v1963_v37  ;;  %v117_v37 = vpack.c.bf16 %v85_v33, %v85_v33 }
  0x5a   :  { %1281 = vmatpush.bf16.msra.mxu2 %v1971_v38  ;;  %v118_v38 = vpack.c.bf16 %v86_v34, %v86_v34 }
  0x5b   :  { %1294 = vmatpush.bf16.msra.mxu3 %v1979_v39  ;;  %v119_v39 = vpack.c.bf16 %v87_v35, %v87_v35 }
  0x5c   :  { %1256 = vmatpush.bf16.msra.mxu0 %v1954_v40  ;;  %v2020_v40 = vld [vmem:[%s2146_s2] ss:$0 sm:$0xff]  ;;  %s2103_s2 = smov [#allocation7]  }
  0x5d   :  { %1269 = vmatpush.bf16.msra.mxu1 %v1962_v41  ;;  %s1362_s24 = sshll.u32 %s2103_s2, 4  ;;  %s1363_s24 = int_to_ptr.vmem [resolvable:$true] %s1362_s24 }
  0x5e   :  { %1282 = vmatpush.bf16.msra.mxu2 %v1970_v42 }
  0x5f   :  { %1295 = vmatpush.bf16.msra.mxu3 %v1978_v43 }
  0x60   :  { %1257 = vmatpush.bf16.msra.mxu0 %v1953_v44 }
  0x61   :  { %1270 = vmatpush.bf16.msra.mxu1 %v1961_v45 }
  0x62   :  { %1283 = vmatpush.bf16.msra.mxu2 %v1969_v46 }
  0x63   :  { %1296 = vmatpush.bf16.msra.mxu3 %v1977_v47 }
  0x64   :  { %1258 = vmatpush.bf16.msra.mxu0 %v1952_v48 }
  0x65   :  { %1271 = vmatpush.bf16.msra.mxu1 %v1960_v49 }
  0x66   :  { %1284 = vmatpush.bf16.msra.mxu2 %v1968_v50 }
  0x67   :  { %1297 = vmatpush.bf16.msra.mxu3 %v1976_v51 }
  0x68   :  { %1259 = vmatpush.bf16.msra.mxu0 %v1951_v52 }
  0x69   :  { %1272 = vmatpush.bf16.msra.mxu1 %v1959_v53 }
  0x6a   :  { %1285 = vmatpush.bf16.msra.mxu2 %v1967_v54 }
  0x6b   :  { %1298 = vmatpush.bf16.msra.mxu3 %v1975_v55  ;;  %1260 = vmatmul.bf16.vlgmr.msra.gmra.mxu0 %v112_v0 }
  0x6c   :  { %1304 = vmatpush.bf16.msrb.mxu0 %v1990_v56  ;;  %1273 = vmatmul.bf16.vlgmr.msra.gmra.mxu1 %v113_v2 }
  0x6d   :  { %1317 = vmatpush.bf16.msrb.mxu1 %v1998_v57  ;;  %1286 = vmatmul.bf16.vlgmr.msra.gmra.mxu2 %v114_v1 }
  0x6e   :  { %1330 = vmatpush.bf16.msrb.mxu2 %v2006_v62  ;;  %1299 = vmatmul.bf16.vlgmr.msra.gmra.mxu3 %v115_v3 }
  0x6f   :  { %1343 = vmatpush.bf16.msrb.mxu3 %v2014_v63 }
  0x70   :  { %1305 = vmatpush.bf16.msrb.mxu0 %v1989_v4 }
  0x71   :  { %1318 = vmatpush.bf16.msrb.mxu1 %v1997_v5 }
  0x72   :  { %1331 = vmatpush.bf16.msrb.mxu2 %v2005_v6 }
  0x73   :  { %1344 = vmatpush.bf16.msrb.mxu3 %v2013_v7 }
  0x74   :  { %1306 = vmatpush.bf16.msrb.mxu0 %v1988_v8 }
  0x75   :  { %1319 = vmatpush.bf16.msrb.mxu1 %v1996_v9 }
  0x76   :  { %1332 = vmatpush.bf16.msrb.mxu2 %v2004_v10 }
  0x77   :  { %1345 = vmatpush.bf16.msrb.mxu3 %v2012_v11 }
  0x78   :  { %1307 = vmatpush.bf16.msrb.mxu0 %v1987_v12 }
  0x79   :  { %1320 = vmatpush.bf16.msrb.mxu1 %v1995_v13 }
  0x7a   :  { %1333 = vmatpush.bf16.msrb.mxu2 %v2003_v14 }
  0x7b   :  { %1346 = vmatpush.bf16.msrb.mxu3 %v2011_v15 }
  0x7c   :  { %1308 = vmatpush.bf16.msrb.mxu0 %v1986_v16 }
  0x7d   :  { %1321 = vmatpush.bf16.msrb.mxu1 %v1994_v17 }
  0x7e   :  { %1334 = vmatpush.bf16.msrb.mxu2 %v2002_v18 }
  0x7f   :  { %1347 = vmatpush.bf16.msrb.mxu3 %v2010_v19 }
  0x80   :  { %1309 = vmatpush.bf16.msrb.mxu0 %v1985_v20 }
  0x81   :  { %1322 = vmatpush.bf16.msrb.mxu1 %v1993_v21 }
  0x82   :  { %1335 = vmatpush.bf16.msrb.mxu2 %v2001_v22 }
  0x83   :  { %1348 = vmatpush.bf16.msrb.mxu3 %v2009_v23 }
  0x84   :  { %1310 = vmatpush.bf16.msrb.mxu0 %v1984_v24 }
  0x85   :  { %1323 = vmatpush.bf16.msrb.mxu1 %v1992_v25 }
  0x86   :  { %1336 = vmatpush.bf16.msrb.mxu2 %v2000_v26 }
  0x87   :  { %1349 = vmatpush.bf16.msrb.mxu3 %v2008_v27 }
  0x88   :  { %1311 = vmatpush.bf16.msrb.mxu0 %v1983_v28 }
  0x89   :  { %1324 = vmatpush.bf16.msrb.mxu1 %v1991_v29 }
  0x8a   :  { %1337 = vmatpush.bf16.msrb.mxu2 %v1999_v30 }
  0x8b   :  { %1350 = vmatpush.bf16.msrb.mxu3 %v2007_v31  ;;  %1312 = vmatmul.bf16.vlgmr.msrb.gmra.mxu0 %v116_v36 }
  0x8c   :  { %1325 = vmatmul.bf16.vlgmr.msrb.gmra.mxu1 %v117_v37 }
  0x8d   :  { %1338 = vmatmul.bf16.vlgmr.msrb.gmra.mxu2 %v118_v38 }
  0x8e   :  { %1351 = vmatmul.bf16.vlgmr.msrb.gmra.mxu3 %v119_v39 }
  0xa8   :  { %v1157_v41 = vpop.f32.mrf.mxu0 }
  0xa9   :  { %v1158_v42 = vadd.f32 %v2020_v40, %v1157_v41  ;;  %v1170_v43 = vpop.f32.mrf.mxu1 }
  0xab   :  { %v1171_v44 = vadd.f32 %v1170_v43, %v1158_v42 }
  0xb0   :  { %v1183_v45 = vpop.f32.mrf.mxu2  ;;  %v1159_v48 = vpop.f32.mrf.mxu0 }
  0xb1   :  { %v1184_v46 = vadd.f32 %v1183_v45, %v1171_v44  ;;  %v1196_v47 = vpop.f32.mrf.mxu3  ;;  %v1172_v50 = vpop.f32.mrf.mxu1 }
  0xb3   :  { %v1197_v49 = vadd.f32 %v1196_v47, %v1184_v46 }
  0xb8   :  { %v1185_v51 = vpop.f32.mrf.mxu2 }
  0xb9   :  { %v1198_v52 = vpop.f32.mrf.mxu3 }
  0xc8   :  { %v1209_v53 = vpop.f32.mrf.mxu0 }
  0xc9   :  { %v1222_v54 = vpop.f32.mrf.mxu1  ;;  %v1210_v63 = vadd.f32 %v1209_v53, %v1197_v49 }
  0xcb   :  { %v1223_v3 = vadd.f32 %v1222_v54, %v1210_v63 }
  0xd0   :  { %v1235_v55 = vpop.f32.mrf.mxu2  ;;  %v1211_v57 = vpop.f32.mrf.mxu0 }
  0xd1   :  { %v1248_v56 = vpop.f32.mrf.mxu3  ;;  %v1224_v58 = vpop.f32.mrf.mxu1  ;;  %v1236_v5 = vadd.f32 %v1235_v55, %v1223_v3 }
  0xd3   :  { %v1249_v8 = vadd.f32 %v1248_v56, %v1236_v5 }
  0xd8   :  { %v1237_v59 = vpop.f32.mrf.mxu2 }
  0xd9   :  { %v1250_v60 = vpop.f32.mrf.mxu3 }
  0xe8   :  { %v1261_v61 = vpop.f32.mrf.mxu0 }
  0xe9   :  { %v1274_v62 = vpop.f32.mrf.mxu1  ;;  %v1262_v9 = vadd.f32 %v1261_v61, %v1249_v8 }
  0xeb   :  { %v1275_v10 = vadd.f32 %v1274_v62, %v1262_v9 }
  0xf0   :  { %v1287_v0 = vpop.f32.mrf.mxu2  ;;  %v1263_v2 = vpop.f32.mrf.mxu0 }
  0xf1   :  { %v1300_v1 = vpop.f32.mrf.mxu3  ;;  %v1276_v4 = vpop.f32.mrf.mxu1  ;;  %v1288_v11 = vadd.f32 %v1287_v0, %v1275_v10 }
  0xf3   :  { %v1301_v12 = vadd.f32 %v1300_v1, %v1288_v11 }
  0xf8   :  { %v1289_v6 = vpop.f32.mrf.mxu2 }
  0xf9   :  { %v1302_v7 = vpop.f32.mrf.mxu3 }
 0x108   :  { %v1313_v13 = vpop.f32.mrf.mxu0 }
 0x109   :  { %v1326_v14 = vpop.f32.mrf.mxu1  ;;  %v1314_v15 = vadd.f32 %v1313_v13, %v1301_v12 }
 0x10b   :  { %v1327_v16 = vadd.f32 %v1326_v14, %v1314_v15 }
 0x110   :  { %v1339_v17 = vpop.f32.mrf.mxu2  ;;  %v1315_v20 = vpop.f32.mrf.mxu0 }
 0x111   :  { %v1352_v18 = vpop.f32.mrf.mxu3  ;;  %v1340_v19 = vadd.f32 %v1339_v17, %v1327_v16  ;;  %v1328_v21 = vpop.f32.mrf.mxu1 }
 0x113   :  { %v1353_v22 = vadd.f32 %v1352_v18, %v1340_v19 }
 0x115   :  { %1356 = vst [vmem:[#allocation7] sm:$0xf] %v1353_v22 }
 0x116   :  { %1367 = dma.vmem_to_hbm [thread:$0]  %s1363_s24, 64, %s1365_s27, [#allocation4]  }
 0x118   :  { %v1341_v23 = vpop.f32.mrf.mxu2 }
 0x119   :  { %v1354_v24 = vpop.f32.mrf.mxu3 }
 0x11a   :  { %2097 = dma.done.wait [#allocation4], 64  }
 0x11b   :  { %2098 = vsyncadd [#allocation4], 4294967232 }
 0x11c   :  { %1372 = vsyncpa [#allocation3], 1 }
 0x11d   :  { %1373 = vsyncpa [#allocation6], 1 }
 0x11e   :  { %1374 = vsyncpa [#allocation4], 1 }

</bundles_post_ra>
